<compile_context>
chip_gen: v6e
topology: v6e:2x2x1
jax: 0.10.0
libtpu: 0.0.40
codegen_flags: <defaults>
</compile_context>

<pallas_src>
import functools

import jax
import jax.numpy as jnp
from jax import lax
from jax.experimental import pallas as pl
from jax.experimental.pallas import tpu as pltpu


# ----------------------------- Pallas kernel -------------------------------- #

def _self_attention_kernel(x_ref, w_all_ref, wo_ref, cos_ref, sin_ref, o_ref,
                           attn_scratch, *, num_heads, num_kv_heads, head_dim,
                           block_b, seq_len):
    """One grid step == `block_b` batch elements (rows = block_b * seq_len)."""
    f32 = jnp.float32
    bf16 = jnp.bfloat16
    H, Hkv, hd, T = num_heads, num_kv_heads, head_dim, seq_len
    nq = H * hd
    nk = Hkv * hd

    x = x_ref[...]                                               # (M, C) bf16

    # One fused projection: [q | q@rot | k | k@rot | v], scale folded into q.
    proj = jnp.dot(x, w_all_ref[...], preferred_element_type=f32)  # (M, 2nq+3nk)
    q = proj[:, :nq]
    qr = proj[:, nq:2 * nq]
    k = proj[:, 2 * nq:2 * nq + nk]
    kr = proj[:, 2 * nq + nk:2 * nq + 2 * nk]
    v = proj[:, 2 * nq + 2 * nk:]

    # RoPE as full-width VPU FMAs; k tables are the prefix of the q tables.
    cos_q = cos_ref[...]                                         # (M, nq) f32
    sin_q = sin_ref[...]
    q = q * cos_q + qr * sin_q
    k = k * cos_q[:, :nk] + kr * sin_q[:, :nk]

    qb = q.astype(bf16)
    kb = k.astype(bf16)
    vb = v.astype(bf16)

    rep = H // Hkv
    # TODO(synk): for larger H replace the static per-head loop with a
    #             head-batched dot_general / fori_loop to bound vreg pressure.
    for b in range(block_b):                                     # static unroll
        r0 = b * T
        for h in range(H):                                       # static unroll
            g = h // rep                                         # GQA kv head
            qh = qb[r0:r0 + T, h * hd:(h + 1) * hd]              # (T, hd)
            kh = kb[r0:r0 + T, g * hd:(g + 1) * hd]              # (T, hd)
            vh = vb[r0:r0 + T, g * hd:(g + 1) * hd]              # (T, hd)

            # scores (already scaled via wq); contract head_dim, no explicit .T
            s = lax.dot_general(qh, kh, (((1,), (1,)), ((), ())),
                                preferred_element_type=f32)      # (T, T)
            m = jnp.max(s, axis=-1, keepdims=True)
            e = jnp.exp(s - m)
            inv = pl.reciprocal(jnp.sum(e, axis=-1, keepdims=True), approx=True)
            p = (e * inv).astype(bf16)
            attn_scratch[r0:r0 + T, h * hd:(h + 1) * hd] = jnp.dot(
                p, vh, preferred_element_type=f32).astype(bf16)

    o_ref[...] = jnp.dot(attn_scratch[...], wo_ref[...],
                         preferred_element_type=f32).astype(o_ref.dtype)


# ------------------------------ wrapper / glue ------------------------------- #

def _rope_tables(T, head_dim, rope_dim, base, rope_scale, pos_offset):
    """cos/sin extended to head_dim, plus rotate_half as a (hd,hd) matrix."""
    rope_dim = min(rope_dim, head_dim)
    inv_freq = 1.0 / (base ** (jnp.arange(0, rope_dim, 2, dtype=jnp.float32) / rope_dim))
    pos = jnp.arange(pos_offset, pos_offset + T, dtype=jnp.float32)
    freqs = jnp.einsum("i,j->ij", pos, inv_freq)                  # (T, rope_dim//2)
    emb = jnp.concatenate([freqs, freqs], axis=-1) * rope_scale   # (T, rope_dim)
    cos = jnp.cos(emb)
    sin = jnp.sin(emb)
    pad = head_dim - rope_dim
    cos_ext = jnp.concatenate([cos, jnp.ones((T, pad), jnp.float32)], axis=-1)
    sin_ext = jnp.concatenate([sin, jnp.zeros((T, pad), jnp.float32)], axis=-1)

    # rot such that (x @ rot) == cat([-x[..., 1::2], x[..., ::2]], -1) on the
    # first rope_dim dims, 0 elsewhere (rotate_half as a matmul).
    rot = jnp.zeros((head_dim, head_dim), jnp.float32)
    half = rope_dim // 2
    for i in range(half):
        rot = rot.at[2 * i + 1, i].set(-1.0)
        rot = rot.at[2 * i, i + half].set(1.0)
    return cos_ext, sin_ext, rot


def _choose_block_b(B, T, target_rows=128):
    """Batch elements per grid step: target ~128 matmul rows, but keep >= 2
    parallel grid steps when B >= 2 so v7x's two TensorCores both get work."""
    bblk = max(1, min(B, target_rows // max(T, 1)))
    while B % bblk:
        bblk -= 1
    if B >= 2 and B // bblk < 2:
        bblk = max(1, bblk // 2)
        while B % bblk:
            bblk -= 1
    return bblk


def self_attention_pallas(x, wq, wk, wv, wo, config, pos_offset=0, rope_scale=1.0):
    """x: (B, T, C) f32. wq/wk/wv/wo in torch Linear layout (out_features, in_features)."""
    B, T, C = x.shape
    H = config["num_heads"]
    Hkv = config["num_kv_heads"]
    hd = C // H
    scale = hd ** (-0.5)

    cos_ext, sin_ext, rot = _rope_tables(
        T, hd, config["rope_dim"], config["rope_base"], rope_scale, pos_offset)

    # torch Linear layout (out, in) -> (in, out)
    wq_t = wq.T.astype(jnp.float32)   # (C, H*hd)
    wk_t = wk.T.astype(jnp.float32)   # (C, Hkv*hd)
    wv_t = wv.T.astype(jnp.float32)   # (C, Hkv*hd)
    wo_t = wo.T.astype(jnp.float32)   # (H*hd, C)

    def fold_rot(w_t, n_heads):
        # Per-head rotate_half applied to weight columns (exact fold).
        w3 = w_t.reshape(C, n_heads, hd)
        return jnp.einsum("chd,de->che", w3, rot).reshape(C, n_heads * hd)

    # One fused bf16 weight slab: [Wq*s | (Wq@rot)*s | Wk | Wk@rot | Wv].
    w_all = jnp.concatenate(
        [wq_t * scale, fold_rot(wq_t, H) * scale,
         wk_t, fold_rot(wk_t, Hkv), wv_t],
        axis=1).astype(jnp.bfloat16)                      # (C, 2*H*hd + 3*Hkv*hd)
    wo_b = wo_t.astype(jnp.bfloat16)

    bblk = _choose_block_b(B, T)
    grid = B // bblk
    M = bblk * T                                          # matmul rows per step
    w_tot = 2 * H * hd + 3 * Hkv * hd

    # cos/sin tiled per head (lanes) and per in-block batch (rows); f32 so the
    # RoPE math is exact on v5e (no bf16 VPU) as well.
    cos_q = jnp.tile(cos_ext, (bblk, H))                  # (M, H*hd) f32
    sin_q = jnp.tile(sin_ext, (bblk, H))

    # Present x / output as (B*T, C) slabs: free row-major reshape, fat M.
    x2 = x.astype(jnp.bfloat16).reshape(B * T, C)

    kernel = functools.partial(
        _self_attention_kernel, num_heads=H, num_kv_heads=Hkv, head_dim=hd,
        block_b=bblk, seq_len=T)

    out = pl.pallas_call(
        kernel,
        out_shape=jax.ShapeDtypeStruct((B * T, C), jnp.bfloat16),
        grid_spec=pltpu.PrefetchScalarGridSpec(
            num_scalar_prefetch=0,
            grid=(grid,),
            in_specs=[
                pl.BlockSpec((M, C), lambda g: (g, 0)),          # x rows
                pl.BlockSpec((C, w_tot), lambda g: (0, 0)),      # fused weights
                pl.BlockSpec((H * hd, C), lambda g: (0, 0)),     # Wo^T
                pl.BlockSpec((M, H * hd), lambda g: (0, 0)),     # cos (q width)
                pl.BlockSpec((M, H * hd), lambda g: (0, 0)),     # sin (q width)
            ],
            out_specs=pl.BlockSpec((M, C), lambda g: (g, 0)),
            scratch_shapes=[pltpu.VMEM((M, H * hd), jnp.bfloat16)],
        ),
        compiler_params=pltpu.CompilerParams(dimension_semantics=("parallel",)),
    )(x2, w_all, wo_b, cos_q, sin_q)

    return out.reshape(B, T, C).astype(jnp.float32)


# --------------------------- pure-JAX reference ------------------------------ #

def _rotate_half_ref(x):
    x1 = x[..., ::2]
    x2 = x[..., 1::2]
    return jnp.concatenate([-x2, x1], axis=-1)


def self_attention_ref(x, wq, wk, wv, wo, config, pos_offset=0, rope_scale=1.0):
    B, T, C = x.shape
    H = config["num_heads"]
    Hkv = config["num_kv_heads"]
    hd = C // H
    q = (x @ wq.T).reshape(B, T, H, hd).transpose(0, 2, 1, 3)
    k = (x @ wk.T).reshape(B, T, Hkv, hd).transpose(0, 2, 1, 3)
    v = (x @ wv.T).reshape(B, T, Hkv, hd).transpose(0, 2, 1, 3)
    if Hkv == 1:
        k = jnp.tile(k, (1, H, 1, 1)); v = jnp.tile(v, (1, H, 1, 1))
    elif Hkv < H:
        rep = H // Hkv
        k = jnp.repeat(k, rep, axis=1); v = jnp.repeat(v, rep, axis=1)
    rope_dim = min(config["rope_dim"], hd)
    if rope_dim > 0:
        inv_freq = 1.0 / (config["rope_base"] ** (
            jnp.arange(0, rope_dim, 2, dtype=jnp.float32) / rope_dim))
        pos = jnp.arange(pos_offset, pos_offset + T, dtype=jnp.float32)
        freqs = jnp.einsum("i,j->ij", pos, inv_freq)
        emb = jnp.concatenate([freqs, freqs], axis=-1) * rope_scale
        cos = jnp.cos(emb)[None]; sin = jnp.sin(emb)[None]
        q1, q2 = q[..., :rope_dim], q[..., rope_dim:]
        k1, k2 = k[..., :rope_dim], k[..., rope_dim:]
        q1 = q1 * cos + _rotate_half_ref(q1) * sin
        k1 = k1 * cos + _rotate_half_ref(k1) * sin
        q = jnp.concatenate([q1, q2], axis=-1)
        k = jnp.concatenate([k1, k2], axis=-1)
    scale = hd ** (-0.5)
    s = jnp.einsum("bhtd,bhsd->bhts", q, k) * scale
    p = jax.nn.softmax(s, axis=-1)
    out = jnp.einsum("bhts,bhsd->bhtd", p, v).transpose(0, 2, 1, 3).reshape(B, T, -1)
    return out @ wo.T


# ----------------------------------- main ------------------------------------ #

if __name__ == "__main__":
    config = dict(hidden_size=64, num_heads=4, num_kv_heads=2,
                  rope_dim=8, rope_base=10000, dropout_rate=0.0)
    B, T, C = 2, 8, config["hidden_size"]
    H, Hkv = config["num_heads"], config["num_kv_heads"]
    hd = C // H

    key = jax.random.PRNGKey(0)
    kx, kq, kk, kv, ko = jax.random.split(key, 5)
    x = jax.random.normal(kx, (B, T, C), dtype=jnp.float32)
    # torch Linear layout: (out_features, in_features), bias=False
    wq = 0.02 * jax.random.normal(kq, (H * hd, C), dtype=jnp.float32)
    wk = 0.02 * jax.random.normal(kk, (Hkv * hd, C), dtype=jnp.float32)
    wv = 0.02 * jax.random.normal(kv, (Hkv * hd, C), dtype=jnp.float32)
    wo = 0.02 * jax.random.normal(ko, (C, H * hd), dtype=jnp.float32)

    out = self_attention_pallas(x, wq, wk, wv, wo, config)
    out = jax.block_until_ready(out)

    ref = self_attention_ref(x, wq, wk, wv, wo, config)
    assert out.shape == (B, T, C)
    # bf16 MXU operands + bf16 output + approx reciprocal -> relaxed tolerance
    # against the f32 reference.
    assert jnp.allclose(out, ref, rtol=5e-2, atol=4e-3), float(jnp.max(jnp.abs(out - ref)))

    print("KERNEL_OK")
</pallas_src>

<mosaic_0001>
module attributes {stable_mosaic.version = 11 : i64} {
  func.func @_self_attention_kernel(%arg0: i32, %arg1: memref<8x64xbf16, #tpu.memory_space<vmem>>, %arg2: memref<64x224xbf16, #tpu.memory_space<vmem>>, %arg3: memref<64x64xbf16, #tpu.memory_space<vmem>>, %arg4: memref<8x64xf32, #tpu.memory_space<vmem>>, %arg5: memref<8x64xf32, #tpu.memory_space<vmem>>, %arg6: memref<8x64xbf16, #tpu.memory_space<vmem>>, %arg7: memref<8x64xbf16, #tpu.memory_space<vmem>>) attributes {dimension_semantics = [#tpu.dimension_semantics<parallel>], iteration_bounds = array<i64: 2>, scalar_prefetch = 0 : i64, scratch_operands = 1 : i64, tpu.core_type = #tpu.core_type<tc>, window_params = [{transform_indices = @transform_0, window_bounds = array<i64: 8, 64>}, {pipeline_mode = #tpu.pipeline_mode<synchronous>, transform_indices = @transform_1, window_bounds = array<i64: 64, 224>}, {pipeline_mode = #tpu.pipeline_mode<synchronous>, transform_indices = @transform_2, window_bounds = array<i64: 64, 64>}, {pipeline_mode = #tpu.pipeline_mode<synchronous>, transform_indices = @transform_3, window_bounds = array<i64: 8, 64>}, {pipeline_mode = #tpu.pipeline_mode<synchronous>, transform_indices = @transform_4, window_bounds = array<i64: 8, 64>}, {transform_indices = @transform_5, window_bounds = array<i64: 8, 64>}]} {
    %c0 = arith.constant 0 : index
    %c0_0 = arith.constant 0 : index
    %0 = vector.load %arg1[%c0, %c0_0] : memref<8x64xbf16, #tpu.memory_space<vmem>>, vector<8x64xbf16>
    %c0_1 = arith.constant 0 : index
    %c0_2 = arith.constant 0 : index
    %1 = vector.load %arg2[%c0_1, %c0_2] : memref<64x224xbf16, #tpu.memory_space<vmem>>, vector<64x224xbf16>
    %cst = arith.constant dense<0.000000e+00> : vector<8x224xf32>
    %2 = tpu.matmul %0, %1, %cst {dimension_numbers = #tpu.dot_dimension_numbers<[1], [0], [0], [1], [0, 0, 1, 1], [], []>} : vector<8x64xbf16>, vector<64x224xbf16>, vector<8x224xf32> -> vector<8x224xf32>
    %3 = vector.extract_strided_slice %2 {offsets = [0, 0], sizes = [8, 64], strides = [1, 1]} : vector<8x224xf32> to vector<8x64xf32>
    %4 = vector.extract_strided_slice %2 {offsets = [0, 64], sizes = [8, 64], strides = [1, 1]} : vector<8x224xf32> to vector<8x64xf32>
    %5 = vector.extract_strided_slice %2 {offsets = [0, 128], sizes = [8, 32], strides = [1, 1]} : vector<8x224xf32> to vector<8x32xf32>
    %6 = vector.extract_strided_slice %2 {offsets = [0, 160], sizes = [8, 32], strides = [1, 1]} : vector<8x224xf32> to vector<8x32xf32>
    %7 = vector.extract_strided_slice %2 {offsets = [0, 192], sizes = [8, 32], strides = [1, 1]} : vector<8x224xf32> to vector<8x32xf32>
    %c0_3 = arith.constant 0 : index
    %c0_4 = arith.constant 0 : index
    %8 = vector.load %arg4[%c0_3, %c0_4] : memref<8x64xf32, #tpu.memory_space<vmem>>, vector<8x64xf32>
    %c0_5 = arith.constant 0 : index
    %c0_6 = arith.constant 0 : index
    %9 = vector.load %arg5[%c0_5, %c0_6] : memref<8x64xf32, #tpu.memory_space<vmem>>, vector<8x64xf32>
    %10 = arith.mulf %3, %8 : vector<8x64xf32>
    %11 = arith.mulf %4, %9 : vector<8x64xf32>
    %12 = arith.addf %10, %11 : vector<8x64xf32>
    %13 = vector.extract_strided_slice %8 {offsets = [0, 0], sizes = [8, 32], strides = [1, 1]} : vector<8x64xf32> to vector<8x32xf32>
    %14 = arith.mulf %5, %13 : vector<8x32xf32>
    %15 = vector.extract_strided_slice %9 {offsets = [0, 0], sizes = [8, 32], strides = [1, 1]} : vector<8x64xf32> to vector<8x32xf32>
    %16 = arith.mulf %6, %15 : vector<8x32xf32>
    %17 = arith.addf %14, %16 : vector<8x32xf32>
    %18 = arith.truncf %12 : vector<8x64xf32> to vector<8x64xbf16>
    %19 = arith.truncf %17 : vector<8x32xf32> to vector<8x32xbf16>
    %20 = arith.truncf %7 : vector<8x32xf32> to vector<8x32xbf16>
    %21 = vector.extract_strided_slice %18 {offsets = [0, 0], sizes = [8, 16], strides = [1, 1]} : vector<8x64xbf16> to vector<8x16xbf16>
    %22 = vector.extract_strided_slice %19 {offsets = [0, 0], sizes = [8, 16], strides = [1, 1]} : vector<8x32xbf16> to vector<8x16xbf16>
    %23 = vector.extract_strided_slice %20 {offsets = [0, 0], sizes = [8, 16], strides = [1, 1]} : vector<8x32xbf16> to vector<8x16xbf16>
    %cst_7 = arith.constant dense<0.000000e+00> : vector<8x8xf32>
    %24 = tpu.matmul %21, %22, %cst_7 {dimension_numbers = #tpu.dot_dimension_numbers<[1], [1], [0], [0], [0, 0, 1, 0], [], []>} : vector<8x16xbf16>, vector<8x16xbf16>, vector<8x8xf32> -> vector<8x8xf32>
    %cst_8 = arith.constant dense<0xFF800000> : vector<8xf32>
    %25 = vector.multi_reduction <maximumf>, %24, %cst_8 [1] : vector<8x8xf32> to vector<8xf32>
    %26 = vector.shape_cast %25 : vector<8xf32> to vector<8x1xf32>
    %27 = vector.broadcast %26 : vector<8x1xf32> to vector<8x8xf32>
    %28 = arith.subf %24, %27 : vector<8x8xf32>
    %29 = math.exp %28 : vector<8x8xf32>
    %cst_9 = arith.constant dense<0.000000e+00> : vector<8xf32>
    %30 = vector.multi_reduction <add>, %29, %cst_9 [1] : vector<8x8xf32> to vector<8xf32>
    %31 = vector.shape_cast %30 : vector<8xf32> to vector<8x1xf32>
    %32 = tpu.reciprocal %31 {approx = true} : vector<8x1xf32> -> vector<8x1xf32>
    %33 = vector.broadcast %32 : vector<8x1xf32> to vector<8x8xf32>
    %34 = arith.mulf %29, %33 : vector<8x8xf32>
    %35 = arith.truncf %34 : vector<8x8xf32> to vector<8x8xbf16>
    %cst_10 = arith.constant dense<0.000000e+00> : vector<8x16xf32>
    %36 = tpu.matmul %35, %23, %cst_10 {dimension_numbers = #tpu.dot_dimension_numbers<[1], [0], [0], [1], [0, 0, 1, 1], [], []>} : vector<8x8xbf16>, vector<8x16xbf16>, vector<8x16xf32> -> vector<8x16xf32>
    %37 = arith.truncf %36 : vector<8x16xf32> to vector<8x16xbf16>
    %c0_11 = arith.constant 0 : index
    %c0_12 = arith.constant 0 : index
    %38 = vector.load %arg7[%c0_11, %c0_12] : memref<8x64xbf16, #tpu.memory_space<vmem>>, vector<8x16xbf16>
    tpu.vector_store %arg7[%c0_11, %c0_12], %37 {strides = array<i32>} : memref<8x64xbf16, #tpu.memory_space<vmem>>, vector<8x16xbf16>,
    %39 = vector.extract_strided_slice %18 {offsets = [0, 16], sizes = [8, 16], strides = [1, 1]} : vector<8x64xbf16> to vector<8x16xbf16>
    %40 = vector.extract_strided_slice %19 {offsets = [0, 0], sizes = [8, 16], strides = [1, 1]} : vector<8x32xbf16> to vector<8x16xbf16>
    %41 = vector.extract_strided_slice %20 {offsets = [0, 0], sizes = [8, 16], strides = [1, 1]} : vector<8x32xbf16> to vector<8x16xbf16>
    %cst_13 = arith.constant dense<0.000000e+00> : vector<8x8xf32>
    %42 = tpu.matmul %39, %40, %cst_13 {dimension_numbers = #tpu.dot_dimension_numbers<[1], [1], [0], [0], [0, 0, 1, 0], [], []>} : vector<8x16xbf16>, vector<8x16xbf16>, vector<8x8xf32> -> vector<8x8xf32>
    %cst_14 = arith.constant dense<0xFF800000> : vector<8xf32>
    %43 = vector.multi_reduction <maximumf>, %42, %cst_14 [1] : vector<8x8xf32> to vector<8xf32>
    %44 = vector.shape_cast %43 : vector<8xf32> to vector<8x1xf32>
    %45 = vector.broadcast %44 : vector<8x1xf32> to vector<8x8xf32>
    %46 = arith.subf %42, %45 : vector<8x8xf32>
    %47 = math.exp %46 : vector<8x8xf32>
    %cst_15 = arith.constant dense<0.000000e+00> : vector<8xf32>
    %48 = vector.multi_reduction <add>, %47, %cst_15 [1] : vector<8x8xf32> to vector<8xf32>
    %49 = vector.shape_cast %48 : vector<8xf32> to vector<8x1xf32>
    %50 = tpu.reciprocal %49 {approx = true} : vector<8x1xf32> -> vector<8x1xf32>
    %51 = vector.broadcast %50 : vector<8x1xf32> to vector<8x8xf32>
    %52 = arith.mulf %47, %51 : vector<8x8xf32>
    %53 = arith.truncf %52 : vector<8x8xf32> to vector<8x8xbf16>
    %cst_16 = arith.constant dense<0.000000e+00> : vector<8x16xf32>
    %54 = tpu.matmul %53, %41, %cst_16 {dimension_numbers = #tpu.dot_dimension_numbers<[1], [0], [0], [1], [0, 0, 1, 1], [], []>} : vector<8x8xbf16>, vector<8x16xbf16>, vector<8x16xf32> -> vector<8x16xf32>
    %55 = arith.truncf %54 : vector<8x16xf32> to vector<8x16xbf16>
    %c0_17 = arith.constant 0 : index
    %c16 = arith.constant 16 : index
    %56 = vector.load %arg7[%c0_17, %c16] : memref<8x64xbf16, #tpu.memory_space<vmem>>, vector<8x16xbf16>
    tpu.vector_store %arg7[%c0_17, %c16], %55 {strides = array<i32>} : memref<8x64xbf16, #tpu.memory_space<vmem>>, vector<8x16xbf16>,
    %57 = vector.extract_strided_slice %18 {offsets = [0, 32], sizes = [8, 16], strides = [1, 1]} : vector<8x64xbf16> to vector<8x16xbf16>
    %58 = vector.extract_strided_slice %19 {offsets = [0, 16], sizes = [8, 16], strides = [1, 1]} : vector<8x32xbf16> to vector<8x16xbf16>
    %59 = vector.extract_strided_slice %20 {offsets = [0, 16], sizes = [8, 16], strides = [1, 1]} : vector<8x32xbf16> to vector<8x16xbf16>
    %cst_18 = arith.constant dense<0.000000e+00> : vector<8x8xf32>
    %60 = tpu.matmul %57, %58, %cst_18 {dimension_numbers = #tpu.dot_dimension_numbers<[1], [1], [0], [0], [0, 0, 1, 0], [], []>} : vector<8x16xbf16>, vector<8x16xbf16>, vector<8x8xf32> -> vector<8x8xf32>
    %cst_19 = arith.constant dense<0xFF800000> : vector<8xf32>
    %61 = vector.multi_reduction <maximumf>, %60, %cst_19 [1] : vector<8x8xf32> to vector<8xf32>
    %62 = vector.shape_cast %61 : vector<8xf32> to vector<8x1xf32>
    %63 = vector.broadcast %62 : vector<8x1xf32> to vector<8x8xf32>
    %64 = arith.subf %60, %63 : vector<8x8xf32>
    %65 = math.exp %64 : vector<8x8xf32>
    %cst_20 = arith.constant dense<0.000000e+00> : vector<8xf32>
    %66 = vector.multi_reduction <add>, %65, %cst_20 [1] : vector<8x8xf32> to vector<8xf32>
    %67 = vector.shape_cast %66 : vector<8xf32> to vector<8x1xf32>
    %68 = tpu.reciprocal %67 {approx = true} : vector<8x1xf32> -> vector<8x1xf32>
    %69 = vector.broadcast %68 : vector<8x1xf32> to vector<8x8xf32>
    %70 = arith.mulf %65, %69 : vector<8x8xf32>
    %71 = arith.truncf %70 : vector<8x8xf32> to vector<8x8xbf16>
    %cst_21 = arith.constant dense<0.000000e+00> : vector<8x16xf32>
    %72 = tpu.matmul %71, %59, %cst_21 {dimension_numbers = #tpu.dot_dimension_numbers<[1], [0], [0], [1], [0, 0, 1, 1], [], []>} : vector<8x8xbf16>, vector<8x16xbf16>, vector<8x16xf32> -> vector<8x16xf32>
    %73 = arith.truncf %72 : vector<8x16xf32> to vector<8x16xbf16>
    %c0_22 = arith.constant 0 : index
    %c32 = arith.constant 32 : index
    %74 = vector.load %arg7[%c0_22, %c32] : memref<8x64xbf16, #tpu.memory_space<vmem>>, vector<8x16xbf16>
    tpu.vector_store %arg7[%c0_22, %c32], %73 {strides = array<i32>} : memref<8x64xbf16, #tpu.memory_space<vmem>>, vector<8x16xbf16>,
    %75 = vector.extract_strided_slice %18 {offsets = [0, 48], sizes = [8, 16], strides = [1, 1]} : vector<8x64xbf16> to vector<8x16xbf16>
    %76 = vector.extract_strided_slice %19 {offsets = [0, 16], sizes = [8, 16], strides = [1, 1]} : vector<8x32xbf16> to vector<8x16xbf16>
    %77 = vector.extract_strided_slice %20 {offsets = [0, 16], sizes = [8, 16], strides = [1, 1]} : vector<8x32xbf16> to vector<8x16xbf16>
    %cst_23 = arith.constant dense<0.000000e+00> : vector<8x8xf32>
    %78 = tpu.matmul %75, %76, %cst_23 {dimension_numbers = #tpu.dot_dimension_numbers<[1], [1], [0], [0], [0, 0, 1, 0], [], []>} : vector<8x16xbf16>, vector<8x16xbf16>, vector<8x8xf32> -> vector<8x8xf32>
    %cst_24 = arith.constant dense<0xFF800000> : vector<8xf32>
    %79 = vector.multi_reduction <maximumf>, %78, %cst_24 [1] : vector<8x8xf32> to vector<8xf32>
    %80 = vector.shape_cast %79 : vector<8xf32> to vector<8x1xf32>
    %81 = vector.broadcast %80 : vector<8x1xf32> to vector<8x8xf32>
    %82 = arith.subf %78, %81 : vector<8x8xf32>
    %83 = math.exp %82 : vector<8x8xf32>
    %cst_25 = arith.constant dense<0.000000e+00> : vector<8xf32>
    %84 = vector.multi_reduction <add>, %83, %cst_25 [1] : vector<8x8xf32> to vector<8xf32>
    %85 = vector.shape_cast %84 : vector<8xf32> to vector<8x1xf32>
    %86 = tpu.reciprocal %85 {approx = true} : vector<8x1xf32> -> vector<8x1xf32>
    %87 = vector.broadcast %86 : vector<8x1xf32> to vector<8x8xf32>
    %88 = arith.mulf %83, %87 : vector<8x8xf32>
    %89 = arith.truncf %88 : vector<8x8xf32> to vector<8x8xbf16>
    %cst_26 = arith.constant dense<0.000000e+00> : vector<8x16xf32>
    %90 = tpu.matmul %89, %77, %cst_26 {dimension_numbers = #tpu.dot_dimension_numbers<[1], [0], [0], [1], [0, 0, 1, 1], [], []>} : vector<8x8xbf16>, vector<8x16xbf16>, vector<8x16xf32> -> vector<8x16xf32>
    %91 = arith.truncf %90 : vector<8x16xf32> to vector<8x16xbf16>
    %c0_27 = arith.constant 0 : index
    %c48 = arith.constant 48 : index
    %92 = vector.load %arg7[%c0_27, %c48] : memref<8x64xbf16, #tpu.memory_space<vmem>>, vector<8x16xbf16>
    tpu.vector_store %arg7[%c0_27, %c48], %91 {strides = array<i32>} : memref<8x64xbf16, #tpu.memory_space<vmem>>, vector<8x16xbf16>,
    %c0_28 = arith.constant 0 : index
    %c0_29 = arith.constant 0 : index
    %93 = vector.load %arg7[%c0_28, %c0_29] : memref<8x64xbf16, #tpu.memory_space<vmem>>, vector<8x64xbf16>
    %c0_30 = arith.constant 0 : index
    %c0_31 = arith.constant 0 : index
    %94 = vector.load %arg3[%c0_30, %c0_31] : memref<64x64xbf16, #tpu.memory_space<vmem>>, vector<64x64xbf16>
    %cst_32 = arith.constant dense<0.000000e+00> : vector<8x64xf32>
    %95 = tpu.matmul %93, %94, %cst_32 {dimension_numbers = #tpu.dot_dimension_numbers<[1], [0], [0], [1], [0, 0, 1, 1], [], []>} : vector<8x64xbf16>, vector<64x64xbf16>, vector<8x64xf32> -> vector<8x64xf32>
    %96 = arith.truncf %95 : vector<8x64xf32> to vector<8x64xbf16>
    %c0_33 = arith.constant 0 : index
    %c0_34 = arith.constant 0 : index
    %97 = vector.load %arg6[%c0_33, %c0_34] : memref<8x64xbf16, #tpu.memory_space<vmem>>, vector<8x64xbf16>
    tpu.vector_store %arg6[%c0_33, %c0_34], %96 {strides = array<i32>} : memref<8x64xbf16, #tpu.memory_space<vmem>>, vector<8x64xbf16>,
    return
  }
  func.func @transform_0(%arg0: i32) -> (i32, i32) {
    %c0_i32 = arith.constant 0 : i32
    %c0_i32_0 = arith.constant 0 : i32
    return %arg0, %c0_i32 : i32, i32
  }
  func.func @transform_1(%arg0: i32) -> (i32, i32) {
    %c0_i32 = arith.constant 0 : i32
    %c0_i32_0 = arith.constant 0 : i32
    %c0_i32_1 = arith.constant 0 : i32
    return %c0_i32, %c0_i32_0 : i32, i32
  }
  func.func @transform_2(%arg0: i32) -> (i32, i32) {
    %c0_i32 = arith.constant 0 : i32
    %c0_i32_0 = arith.constant 0 : i32
    %c0_i32_1 = arith.constant 0 : i32
    return %c0_i32, %c0_i32_0 : i32, i32
  }
  func.func @transform_3(%arg0: i32) -> (i32, i32) {
    %c0_i32 = arith.constant 0 : i32
    %c0_i32_0 = arith.constant 0 : i32
    %c0_i32_1 = arith.constant 0 : i32
    return %c0_i32, %c0_i32_0 : i32, i32
  }
  func.func @transform_4(%arg0: i32) -> (i32, i32) {
    %c0_i32 = arith.constant 0 : i32
    %c0_i32_0 = arith.constant 0 : i32
    %c0_i32_1 = arith.constant 0 : i32
    return %c0_i32, %c0_i32_0 : i32, i32
  }
  func.func @transform_5(%arg0: i32) -> (i32, i32) {
    %c0_i32 = arith.constant 0 : i32
    %c0_i32_0 = arith.constant 0 : i32
    return %arg0, %c0_i32 : i32, i32
  }
}

</mosaic_0001>

<bundles_post_ra>
// kernel: tpu_custom_call.1
= control target key start
LH: loop header
LB: loop body
LE: loop exit
PB: predicated region body
PF: predicated region fallthrough
CT: control target
= control target key end

     0   :  { %10 = vsyncpa [#allocation4], 0  ;;  %s1863_s0 = inlined_call_operand.hbm [shape: bf16[16,64], index: 0, kind: input, shape index: {}]   ;;  %s1864_s1 = inlined_call_operand.hbm [shape: bf16[64,224], index: 1, kind: input, shape index: {}]   ;;  %s1865_s2 = inlined_call_operand.hbm [shape: bf16[64,64], index: 2, kind: input, shape index: {}]   ;;  %s1866_s3 = inlined_call_operand.hbm [shape: f32[8,64], index: 3, kind: input, shape index: {}]   ;;  %s1867_s4 = inlined_call_operand.hbm [shape: f32[8,64], index: 4, kind: input, shape index: {}]   ;;  %s1868_s5 = inlined_call_operand.hbm [shape: bf16[16,64], index: 5, kind: output, shape index: {}]  }
   0x1   :  { %12 = vsyncpa [#allocation4 + $0x1], 0 }
   0x2   :  { %13 = vsyncpa [#allocation7], 0 }
   0x3   :  { %14 = vsyncpa [#allocation10], 0 }
   0x4   :  { %15 = vsyncpa [#allocation5], 0 }
   0x5   :  { %17 = vsyncpa [#allocation5 + $0x1], 0  ;;  %s1586_s18 = smov 0   ;;  %s1588_s19 = smov 0  }
   0x6   :  { %s1590_s20 = smov 0   ;;  %s1592_s21 = smov 0  }
   0x7 LB: > { %s1536_s22 = smov [#allocation6]   ;;  %s1607_s24 = sadd.s32 4294967295, %s1534_s21   ;;  %s1534_s21 = sphi %s1592_s21, %s1892_s21   ;;  %s1530_s20 = sphi %s1590_s20, %s1891_s20   ;;  %s1526_s19 = sphi %s1588_s19, %s1890_s19   ;;  %s1522_s18 = sphi %s1586_s18, %s1889_s18  }
   0x8   : > { %s176_s23 = sshll.u32 %s1536_s22, 4  ;;  %p1069_p0 = scmp.ge.s32.totalorder %s1534_s21, 1  ;;  %s177_s23 = int_to_ptr.vmem [resolvable:$true] %s176_s23 }
   0x9   : > { %p1869_p1 = scmp.eq.s32.totalorder %s1607_s24, 0  ;;  %p164_p2 = scmp.lt.s32.totalorder %s1534_s21, 3 }
   0xa   : > { %s1537_s26 = smov [#allocation9]   ;;  %s1538_s29 = smov [#allocation8]  }
   0xb   : > { %p1612_p3 = pnand %p1069_p0, %p164_p2  ;;  %s203_s27 = sshll.u32 %s1537_s26, 4  ;;  %s204_s27 = int_to_ptr.vmem [resolvable:$true] %s203_s27 }
   0xc   : > { %s189_s30 = sshll.u32 %s1538_s29, 4  ;;  %s1341_s6 = scalar_lea.vmem %s177_s23, 1024  ;;  %s1625_s30 = int_to_ptr.vmem [resolvable:$true] %s189_s30 }
   0xd   : > { %s1873_s25 = scalar_select %p1612_p3, 1, 0 }
   0xe   : > { %p1217_p5 = pneg %p1612_p3  ;;  %p1342_p8 = scmp.ne.s32.totalorder %s177_s23, %s1341_s6 }
   0xf   : > { %p1349_p11 = scmp.lt.s32.totalorder %s177_s23, %s177_s23  ;;  %p1350_p12 = scmp.lt.s32.totalorder %s1341_s6, %s1341_s6 }
  0x10   : > { %p1621_p6 = pnand %p1217_p5, %p1869_p1 }
  0x11   : > { %p1351_p13 = por %p1350_p12, %p1349_p11 }
  0x12   : > { %p1332_p7 = pneg %p1621_p6 }
  0x14   : > { %p1344_p9 = pnand %p1342_p8, %p1332_p7 }
  0x16   : > { %p1345_p10 = pneg %p1344_p9 }
  0x18   : > { %p1352_p0 = pnand %p1351_p13, %p1345_p10 }
  0x1a   : > { %1355 = shalt.err (!%p1352_p0)
}
  0x1b   : > { %s1539_s7 = smov 128   ;;  %s1540_s8 = smov 8  }
  0x1c   : > { %1220 = dma.hbm_to_vmem [thread:$0]  (!%p1621_p6), %s1864_s1, 1024, %s177_s23, [#allocation7], %s1539_s7, %s1539_s7, %s1540_s8  }
  0x1d   : > { %s1367_s11 = scalar_lea.vmem %s204_s27, 128  ;;  %p1375_p9 = scmp.lt.s32.totalorder %s204_s27, %s204_s27 }
  0x1e   : > { %p1368_p2 = scmp.ne.s32.totalorder %s204_s27, %s1367_s11  ;;  %p1376_p4 = scmp.lt.s32.totalorder %s1367_s11, %s1367_s11 }
  0x20   : > { %p1370_p5 = pnand %p1368_p2, %p1332_p7  ;;  %p1377_p11 = por %p1376_p4, %p1375_p9 }
  0x22   : > { %p1371_p8 = pneg %p1370_p5 }
  0x24   : > { %p1378_p10 = pnand %p1377_p11, %p1371_p8 }
  0x26   : > { %1381 = shalt.err (!%p1378_p10)
}
  0x27   : > { %1226 = dma.hbm_to_vmem [thread:$0]  (!%p1621_p6), %s1866_s3, 128, %s204_s27, [#allocation10]  }
  0x28   : > { %s1393_s14 = scalar_lea.vmem %s1625_s30, 512  ;;  %p1401_p4 = scmp.lt.s32.totalorder %s1625_s30, %s1625_s30 }
  0x29   : > { %p1394_p12 = scmp.ne.s32.totalorder %s1625_s30, %s1393_s14  ;;  %p1402_p2 = scmp.lt.s32.totalorder %s1393_s14, %s1393_s14 }
  0x2b   : > { %p1396_p13 = pnand %p1394_p12, %p1332_p7  ;;  %p1403_p5 = por %p1402_p2, %p1401_p4 }
  0x2d   : > { %p1397_p0 = pneg %p1396_p13 }
  0x2f   : > { %p1404_p8 = pnand %p1403_p5, %p1397_p0 }
  0x31   : > { %1407 = shalt.err (!%p1404_p8)
}
  0x32   : > { %s1541_s15 = smov 64   ;;  %s1542_s16 = smov 4  }
  0x33   : > { %1223 = dma.hbm_to_vmem [thread:$0]  (!%p1621_p6), %s1865_s2, 512, %s1625_s30, [#allocation7], %s1541_s15, %s1541_s15, %s1542_s16  }
  0x34   : > { %s1543_s23 = smov [#allocation11]  }
  0x35   : > { %s214_s26 = sshll.u32 %s1543_s23, 4  ;;  %s215_s26 = int_to_ptr.vmem [resolvable:$true] %s214_s26 }
  0x36   : > { %s1419_s27 = scalar_lea.vmem %s215_s26, 128  ;;  %p1427_p12 = scmp.lt.s32.totalorder %s215_s26, %s215_s26 }
  0x37   : > { %p1420_p9 = scmp.ne.s32.totalorder %s215_s26, %s1419_s27  ;;  %p1428_p13 = scmp.lt.s32.totalorder %s1419_s27, %s1419_s27 }
  0x39   : > { %p1422_p11 = pnand %p1420_p9, %p1332_p7  ;;  %p1429_p0 = por %p1428_p13, %p1427_p12 }
  0x3b   : > { %p1423_p10 = pneg %p1422_p11 }
  0x3d   : > { %p1430_p4 = pnand %p1429_p0, %p1423_p10 }
  0x3f   : > { %1433 = shalt.err (!%p1430_p4)
}
  0x40   : > { %1229 = dma.hbm_to_vmem [thread:$0]  (!%p1621_p6), %s1867_s4, 128, %s215_s26, [#allocation10]  }
  0x41   : > { %s1068_s30 = sadd.s32 4294967294, %s1534_s21   ;;  %s1668_s28 = sadd.s32 1, %s1534_s21  }
  0x42   : > { %s27_s7 = ssub.s32 %s1534_s21, %s1668_s28  ;;  %s30_s8 = sadd.s32 1, %s1530_s20 }
  0x43   : > { %p28_p7 = scmp.eq.s32.totalorder %s27_s7, 0  ;;  %p37_p2 = scmp.ne.s32.totalorder %s1530_s20, %s1526_s19 }
  0x44   : > { %p38_p5 = scmp.eq.s32.totalorder %s1534_s21, 0  ;;  %p43_p8 = scmp.ne.s32.totalorder %s1526_s19, %s1522_s18 }
  0x45   : > { %s1679_s9 = scalar_select %p28_p7, %s1530_s20, %s30_s8  }
  0x46   : > { %p1681_p9 = por %p38_p5, %p37_p2  ;;  %p1687_p6 = por %p1869_p1, %p43_p8 }
  0x47   : > { %p151_p11 = scmp.eq.s32.totalorder %s1607_s24, 1  ;;  %p157_p10 = scmp.eq.s32.totalorder %s1068_s30, 1 }
  0x48   : > { %s1876_s11 = scalar_select %p1687_p6, 1, 0 }
  0x49   : > { %p1242_p12 = scmp.lt.s32.totalorder %s1534_s21, 2  ;;  %s225_s12 = sand.u32 1, %s1530_s20  }
  0x4a   : > { %p1694_p13 = por %p151_p11, %p37_p2  ;;  %p1698_p0 = por %p157_p10, %p43_p8 }
  0x4b   : > { %s1075_s15 = sshll.u32 %s225_s12, 2  ;;  %s1076_s16 = sshll.u32 %s1534_s21, 6 }
  0x4c   : > { %s1877_s13 = scalar_select %p1694_p13, 1, 0 }
  0x4d   : > { %s1878_s14 = scalar_select %p1698_p0, 1, 0 }
  0x4e   : > { %s1706_s23 = scalar_lea.hbm %s1863_s0, %s1076_s16  ;;  %s229_s26 = scalar_lea.vmem [#allocation3], %s1075_s15 }
  0x4f   : > { %s236_s27 = sshll.u32 %s229_s26, 4  ;;  %p1710_p4 = pnand %p1242_p12, %p1681_p9  ;;  %s237_s27 = int_to_ptr.vmem [resolvable:$true] %s236_s27 }
  0x50   : > { %s226_s6 = scalar_lea.sflag [#allocation4], %s225_s12  ;;  %s1434_s30 = scalar_lea.hbm %s1706_s23, 64 }
  0x51   : > { %p1435_p7 = scmp.ne.s32.totalorder %s1706_s23, %s1434_s30  ;;  %p1436_p2 = pneg %p1710_p4 }
  0x52   : > { %s1439_s16 = scalar_lea.hbm %s1863_s0, 128  ;;  %p1440_p11 = scmp.lt.s32.totalorder %s1706_s23, %s1863_s0 }
  0x53   : > { %p1437_p5 = pnand %p1436_p2, %p1435_p7  ;;  %p1441_p9 = scmp.lt.s32.totalorder %s1439_s16, %s1434_s30 }
  0x55   : > { %p1438_p8 = pneg %p1437_p5  ;;  %p1442_p10 = por %p1441_p9, %p1440_p11 }
  0x57   : > { %p1443_p12 = pnand %p1442_p10, %p1438_p8 }
  0x59   : > { %1446 = shalt.err (!%p1443_p12)
}
  0x5a   : > { %s1447_s10 = scalar_lea.vmem %s237_s27, 64  ;;  %s1544_s12 = smov [#allocation3]  }
  0x5b   : > { %p1448_p1 = scmp.ne.s32.totalorder %s237_s27, %s1447_s10  ;;  %s1452_s22 = sshll.u32 %s1544_s12, 4  ;;  %s1453_s22 = int_to_ptr.vmem [resolvable:$false] %s1452_s22 }
  0x5c   : > { %s1454_s26 = scalar_lea.vmem %s1453_s22, 128  ;;  %p1455_p7 = scmp.lt.s32.totalorder %s237_s27, %s1453_s22 }
  0x5d   : > { %p1450_p0 = pnand %p1448_p1, %p1436_p2  ;;  %p1456_p5 = scmp.lt.s32.totalorder %s1454_s26, %s1447_s10 }
  0x5f   : > { %p1451_p13 = pneg %p1450_p0  ;;  %p1457_p6 = por %p1456_p5, %p1455_p7 }
  0x61   : > { %p1458_p3 = pnand %p1457_p6, %p1451_p13 }
  0x63   : > { %1461 = shalt.err (!%p1458_p3)
}
  0x64   : > { %1233 = dma.hbm_to_vmem [thread:$0]  (!%p1710_p4), %s1706_s23, 64, %s237_s27, %s226_s6  }
  0x65   : > { %p1880_p8 = scmp.ne.s32.totalorder %s1873_s25, 0 }
  0x66   : > { %s1731_s30 = sand.u32 (!%p1880_p8), 1, %s1526_s19   ;;  %p1881_p1 = scmp.ne.s32.totalorder (!%p1880_p8), %s1876_s11, 0 }
  0x67   : > { %245 = sbr.rel (%p1880_p8) target bundleno = 2021 (0x7e5), region = 40  ;;  %s1078_s7 = sshll.u32 (!%p1880_p8), %s1731_s30, 2 }
  0x68   : > { %s248_s8 = scalar_lea.sflag (!%p1880_p8), [#allocation4], %s1731_s30  ;;  %s251_s16 = scalar_lea.vmem (!%p1880_p8), [#allocation3], %s1078_s7 }
  0x6c   : > { %1505 = dma.done.wait (%p1881_p1), %s248_s8, 64  }
  0x6d   : > { %1507 = vsyncadd (%p1881_p1), %s248_s8, 4294967232  ;;  %p1882_p3 = scmp.eq.s32.totalorder %s1607_s24, 0 }
  0x6f   : > { %1509 = dma.done.wait (%p1882_p3), [#allocation7], 1536   ;;  %p1883_p6 = pmov %p1882_p3 }
  0x70   : > { %p1884_p13 = pmov %p1882_p3 }
  0x71   : > { %1511 = vsyncadd (%p1883_p6), [#allocation7], 4294965760 }
  0x72   : > { %1513 = dma.done.wait (%p1884_p13), [#allocation10], 256   ;;  %p1885_p0 = pmov %p1882_p3 }
  0x73   : > { %v1545_v0 = vmov 0   ;;  %v1298_v1 = vld [vmem:[#allocation6 + $0x34] ss:$8 sps:$4 sm:$0xff]   ;;  %v1300_v2 = vld [vmem:[#allocation6 + $0x30] ss:$8 sps:$4 sm:$0xff]   ;;  %v390_v7 = vld [vmem:[#allocation11] sm:$0xff] }
  0x74   : > { %1515 = vsyncadd (%p1885_p0), [#allocation10], 4294967040  ;;  %380 = vmatprep.mubr.bf16.mxu0 %v1545_v0  ;;  %356 = vmatprep.subr.bf16.mxu0 %v1298_v1  ;;  %v1301_v3 = vld [vmem:[#allocation6 + $0x24] ss:$8 sps:$4 sm:$0xff]   ;;  %v1303_v4 = vld [vmem:[#allocation6 + $0x20] ss:$8 sps:$4 sm:$0xff]  }
  0x75   : > { %357 = vmatpush1.bf16.msra.mxu0 %v1300_v2  ;;  %v1304_v5 = vld [vmem:[#allocation6 + $0x14] ss:$8 sps:$4 sm:$0xff]   ;;  %v1306_v6 = vld [vmem:[#allocation6 + $0x10] ss:$8 sps:$4 sm:$0xff]   ;;  %s1546_s25 = smov 32   ;;  %s1547_s11 = smov 64  }
  0x76   : > { %358 = vmatprep.subr.bf16.mxu0 %v1301_v3  ;;  %403 = vrot.lane.b32.xlu0 %v390_v7, %s1546_s25  ;;  %v1307_v8 = vld [vmem:[#allocation6 + $0x4] ss:$8 sps:$4 sm:$0xff]   ;;  %v1309_v9 = vld [vmem:[#allocation6] ss:$8 sps:$4 sm:$0xff]   ;;  %v295_v10 = vld [vmem:[%s251_s16] sm:$0xf] }
  0x77   : > { %vm344_vm0 = vcmask 523264   ;;  %v1548_v11 = vmov 0.0   ;;  %vm1549_vm1 = vmmov 0   ;;  %s1550_s23 = smov 96   ;;  %v389_v20 = vld [vmem:[#allocation9] sm:$0xff]  ;;  %vm415_vm2 = vcmask 130048  }
  0x78   : > { %1137 = vmatprep.subr.bf16.mxu1 %v1548_v11  ;;  %1139 = vmatprep.mubr.msk.bf16.mxu1 %vm1549_vm1, %v1548_v11  ;;  %vm462_vm3 = vcmask 64512   ;;  %s1551_s27 = smov 112   ;;  %s1552_s29 = smov 80   ;;  %vm481_vm4 = vcmask 1043456   ;;  %vm526_vm5 = vcmask 125952   ;;  %vm636_vm6 = vcmask 257152  }
  0x79   : > { %359 = vmatpush1.bf16.msra.mxu0 %v1303_v4  ;;  %s1553_s6 = smov 48   ;;  %s1554_s15 = smov 16   ;;  %vm756_vm7 = vcmask 388352   ;;  %vm865_vm8 = vcmask 519552   ;;  %vm944_vm9 = vcmask 519168  }
  0x7a   : > { %360 = vmatprep.subr.bf16.mxu0 %v1304_v5  ;;  %393 = vrot.lane.b32.xlu0 %v390_v7, %s1547_s11  ;;  %s1110_s17 = sshll.u32 %s1607_s24, 6  ;;  %s293_s10 = scalar_lea.vmem [#allocation12], %s1078_s7 }
  0x7b   : > { %s960_s12 = sshll.u32 %s293_s10, 4  ;;  %s1820_s8 = scalar_lea.hbm %s1868_s5, %s1110_s17  ;;  %s1822_s12 = int_to_ptr.vmem [resolvable:$true] %s960_s12 }
  0x7c   : > { %s947_s24 = scalar_lea.sflag [#allocation5], %s1731_s30  ;;  %s1462_s16 = scalar_lea.vmem %s1822_s12, 64 }
  0x7d   : > { %361 = vmatpush1.bf16.msra.mxu0 %v1306_v6  ;;  %p1463_p4 = scmp.ne.s32.totalorder %s1822_s12, %s1462_s16  ;;  %p1886_p2 = scmp.ne.s32.totalorder %s1877_s13, 0 }
  0x7e   : > { %362 = vmatprep.subr.bf16.mxu0 %v1307_v8  ;;  %s1555_s7 = smov [#allocation12]  }
  0x7f   : > { %p1464_p11 = pnand %p1463_p4, %p1886_p2 }
  0x81   : > { %363 = vmatpush1.bf16.msra.mxu0 %v1309_v9  ;;  %p1465_p9 = pneg %p1464_p11 }
  0x82   : > { %1161 = vmatprep.subr.bf16.mxu0 %v1548_v11 }
  0x84   : > { %1092 = vmatmul.mubr.msk.bf16.vlgmr.msra.gmra.mxu0 %vm344_vm0, %v295_v10 }
  0x85   : > { %1163 = vmatprep.mubr.msk.bf16.mxu0 %vm1549_vm1, %v1548_v11 }
  0xe8   : > { %v404_v12 = vpop.permute.xlu0 %403 }
  0xec   : > { %v394_v16 = vpop.permute.xlu0 %393 }
 0x144   : > { %v382_v13 = vpop.f32.mrf.mxu0 }
 0x145   : > { %v396_v19 = vmul.f32 %v394_v16, %v382_v13  ;;  %v391_v26 = vmul.f32 %v389_v20, %v382_v13 }
 0x146   : > { %v384_v14 = vpop.f32.mrf.mxu0 }
 0x147   : > { %v406_v15 = vmul.f32 %v404_v12, %v384_v14  ;;  %v402_v21 = vmul.f32 %v389_v20, %v384_v14  ;;  %v1766_v35 = vpack.c.bf16 %v384_v14, %v384_v14 }
 0x148   : > { %v386_v17 = vpop.f32.mrf.mxu0 }
 0x149   : > { %408 = vrot.lane.b32.xlu1 %v406_v15, %s1550_s23 }
 0x14a   : > { %v387_v18 = vpop.f32.mrf.mxu0 }
 0x14d   : > { %398 = vrot.lane.b32.xlu1 %v396_v19, %s1547_s11 }
 0x1bb   : > { %v409_v22 = vpop.permute.xlu1 %408 }
 0x1bc   : > { %v411_v23 = vadd.f32 %v409_v22, %v402_v21 }
 0x1be   : > { %v413_v24 = vpack.c.bf16 %v411_v23, %v411_v23 }
 0x1bf   : > { %v399_v25 = vpop.permute.xlu1 %398 }
 0x1c0   : > { %v420_v27 = vsel %vm415_vm2, %v413_v24, 0  ;;  %v401_v28 = vadd.f32 %v399_v25, %v391_v26 }
 0x1c1   : > { %1138 = vmatpush3.bf16.xpose.msra.mxu1 %v420_v27 }
 0x1c2   : > { %1143 = vmatprep.subr.bf16.mxu1 %v1548_v11  ;;  %v412_v29 = vpack.c.bf16 %v401_v28, %v401_v28 }
 0x1c8   : > { %1140 = vmatmul.mubr.msk.bf16.vlgmr.msra.gmra.mxu1 %vm415_vm2, %v412_v29 }
 0x1c9   : > { %1145 = vmatprep.mubr.msk.bf16.mxu1 %vm1549_vm1, %v1548_v11 }
 0x288   : > { %v456_v30 = vpop.f32.mrf.mxu1 }
 0x289   : > { %v463_v31 = vsel %vm462_vm3, %v456_v30, -inf }
 0x28a   : > { %464 = vmax.xlane.f32.xlu0 %v463_v31  ;;  %v1141_v32 = vpop.f32.mrf.mxu1 }
 0x28c   : > { %v459_v33 = vpop.f32.mrf.mxu1 }
 0x28e   : > { %v1142_v34 = vpop.f32.mrf.mxu1 }
 0x2a0   : > { %476 = vrot.lane.b32.xlu0 %v1766_v35, %s1547_s11 }
 0x2a4   : > { %641 = vrot.lane.b32.xlu0 %v413_v24, %s1551_s27 }
 0x2a8   : > { %758 = vrot.lane.b32.xlu0 %v412_v29, %s1552_s29 }
 0x313   : > { %v465_v36 = vpop.xlane.xlu0 %464 }
 0x314   : > { %v466_v37 = vsub.f32 %v456_v30, %v465_v36 }
 0x316   : > { %v467_v38 = vmul.f32 1.442695, %v466_v37 }
 0x317   : > { %v477_v39 = vpop.permute.xlu0 %476 }
 0x318   : > { %1314 = vpow2.f32 %v467_v38  ;;  %v483_v40 = vsel %vm481_vm4, %v477_v39, 0  ;;  %v1310_v38 = vld [vmem:[#allocation8 + $0x18] sm:$0xff]  }
 0x319   : > { %1144 = vmatpush3.bf16.msra.mxu1 %v483_v40 }
 0x31a   : > { %1149 = vmatprep.subr.bf16.mxu1 %v1548_v11 }
 0x31b   : > { %v642_v41 = vpop.permute.xlu0 %641 }
 0x31c   : > { %v647_v42 = vsel %vm415_vm2, %v642_v41, 0 }
 0x31d   : > { %1162 = vmatpush3.bf16.xpose.msra.mxu0 %v647_v42 }
 0x31e   : > { %1173 = vmatprep.subr.bf16.mxu0 %v1548_v11 }
 0x31f   : > { %v759_v50 = vpop.permute.xlu0 %758 }
 0x325   : > { %v1315_v43 = vpop.eup %1314 }
 0x326   : > { %v469_v44 = vsel %vm462_vm3, %v1315_v43, 0.0 }
 0x327   : > { %470 = vadd.xlane.f32.xlu1 %v469_v44 }
 0x338   : > { %529 = vrot.lane.b32.xlu1 %v412_v29, %s1551_s27 }
 0x33c   : > { %638 = vrot.lane.b32.xlu1 %v412_v29, %s1550_s23 }
 0x3b0   : > { %v471_v45 = vpop.xlane.xlu1 %470 }
 0x3b1   : > { %1316 = vrcp.f32 %v471_v45  ;;  %v1312_v45 = vld [vmem:[#allocation8 + $0x8] sm:$0xff]  }
 0x3b4   : > { %v530_v46 = vpop.permute.xlu1 %529 }
 0x3b8   : > { %v639_v47 = vpop.permute.xlu1 %638 }
 0x3b9   : > { %1164 = vmatmul.mubr.msk.bf16.vlgmr.msra.gmra.mxu0 %vm415_vm2, %v639_v47  ;;  %v1313_v47 = vld [vmem:[#allocation8] sm:$0xff]  }
 0x3ba   : > { %1174 = vmatpush3.bf16.xpose.msra.mxu0 %v647_v42  ;;  %1175 = vmatprep.mubr.msk.bf16.mxu0 %vm1549_vm1, %v1548_v11 }
 0x3bb   : > { %1185 = vmatprep.subr.bf16.mxu0 %v1548_v11 }
 0x3be   : > { %v1317_v48 = vpop.eup %1316 }
 0x3bf   : > { %v473_v49 = vmul.f32 %v1317_v48, %v1315_v43 }
 0x3c1   : > { %1176 = vmatmul.mubr.msk.bf16.vlgmr.msra.gmra.mxu0 %vm415_vm2, %v759_v50  ;;  %v474_v51 = vpack.c.bf16 %v473_v49, %v473_v49 }
 0x3c2   : > { %1193 = vmatprep.mubr.msk.bf16.mxu0 %vm1549_vm1, %v1548_v11  ;;  %1186 = vmatpush3.bf16.msra.mxu0 %v1310_v38 }
 0x3c3   : > { %1146 = vmatmul.mubr.msk.bf16.vlgmr.msra.gmra.mxu1 %vm462_vm3, %v474_v51  ;;  %1187 = vmatprep.subr.bf16.mxu0 %v1548_v11 }
 0x3c4   : > { %1150 = vmatpush3.bf16.xpose.msra.mxu1 %v420_v27  ;;  %1151 = vmatprep.mubr.msk.bf16.mxu1 %vm1549_vm1, %v1548_v11 }
 0x3c5   : > { %1155 = vmatprep.subr.bf16.mxu1 %v1548_v11 }
 0x3cb   : > { %1152 = vmatmul.mubr.msk.bf16.vlgmr.msra.gmra.mxu1 %vm415_vm2, %v530_v46 }
 0x3cc   : > { %1156 = vmatpush3.bf16.msra.mxu1 %v483_v40  ;;  %1157 = vmatprep.mubr.msk.bf16.mxu1 %vm1549_vm1, %v1548_v11  ;;  %v1311_v40 = vld [vmem:[#allocation8 + $0x10] sm:$0xff]  }
 0x3cd   : > { %1167 = vmatprep.subr.bf16.mxu1 %v1548_v11  ;;  %1188 = vmatpush3.bf16.msra.mxu0 %v1311_v40 }
 0x3ce   : > { %1189 = vmatprep.subr.bf16.mxu0 %v1548_v11 }
 0x3d1   : > { %1190 = vmatpush3.bf16.msra.mxu0 %v1312_v45 }
 0x3d2   : > { %1191 = vmatprep.subr.bf16.mxu0 %v1548_v11 }
 0x3d5   : > { %1192 = vmatpush3.bf16.msra.mxu0 %v1313_v47 }
 0x479   : > { %v683_v52 = vpop.f32.mrf.mxu0 }
 0x47a   : > { %v689_v53 = vsel %vm462_vm3, %v683_v52, -inf }
 0x47b   : > { %690 = vmax.xlane.f32.xlu0 %v689_v53  ;;  %v1165_v54 = vpop.f32.mrf.mxu0 }
 0x47d   : > { %v686_v55 = vpop.f32.mrf.mxu0 }
 0x47f   : > { %v1166_v56 = vpop.f32.mrf.mxu0 }
 0x481   : > { %v797_v57 = vpop.f32.mrf.mxu0 }
 0x482   : > { %v803_v58 = vsel %vm462_vm3, %v797_v57, -inf }
 0x483   : > { %v519_v59 = vpop.f32.mrf.mxu1  ;;  %804 = vmax.xlane.f32.xlu0 %v803_v58  ;;  %v1177_v60 = vpop.f32.mrf.mxu0 }
 0x484   : > { %v525_v61 = vpack.c.bf16 %v519_v59, %v519_v59 }
 0x485   : > { %v1147_v62 = vpop.f32.mrf.mxu1  ;;  %v800_v63 = vpop.f32.mrf.mxu0 }
 0x486   : > { %527 = vst.msk [vmem:[#allocation2] sm:$0xf] %vm526_vm5, %v525_v61 }
 0x487   : > { %v522_v0 = vpop.f32.mrf.mxu1  ;;  %v1178_v1 = vpop.f32.mrf.mxu0 }
 0x489   : > { %v1148_v2 = vpop.f32.mrf.mxu1 }
 0x48b   : > { %v568_v3 = vpop.f32.mrf.mxu1 }
 0x48c   : > { %v574_v4 = vsel %vm462_vm3, %v568_v3, -inf }
 0x48d   : > { %575 = vmax.xlane.f32.xlu1 %v574_v4  ;;  %v1153_v5 = vpop.f32.mrf.mxu1 }
 0x48f   : > { %v571_v6 = vpop.f32.mrf.mxu1 }
 0x491   : > { %v1154_v7 = vpop.f32.mrf.mxu1 }
 0x504   : > { %v691_v8 = vpop.xlane.xlu0 %690 }
 0x505   : > { %v692_v9 = vsub.f32 %v683_v52, %v691_v8 }
 0x507   : > { %v693_v10 = vmul.f32 1.442695, %v692_v9 }
 0x509   : > { %1318 = vpow2.f32 %v693_v10 }
 0x50c   : > { %v805_v12 = vpop.xlane.xlu0 %804 }
 0x50d   : > { %v806_v13 = vsub.f32 %v797_v57, %v805_v12 }
 0x50f   : > { %v807_v18 = vmul.f32 1.442695, %v806_v13 }
 0x516   : > { %v1319_v14 = vpop.eup %1318  ;;  %v576_v15 = vpop.xlane.xlu1 %575 }
 0x517   : > { %v577_v16 = vsub.f32 %v568_v3, %v576_v15  ;;  %v695_v17 = vsel %vm462_vm3, %v1319_v14, 0.0 }
 0x518   : > { %696 = vadd.xlane.f32.xlu0 %v695_v17 }
 0x519   : > { %v578_v19 = vmul.f32 1.442695, %v577_v16 }
 0x51b   : > { %1320 = vpow2.f32 %v578_v19 }
 0x51c   : > { %1322 = vpow2.f32 %v807_v18 }
 0x528   : > { %v1321_v20 = vpop.eup %1320 }
 0x529   : > { %v580_v21 = vsel %vm462_vm3, %v1321_v20, 0.0  ;;  %v1323_v22 = vpop.eup %1322 }
 0x52a   : > { %581 = vadd.xlane.f32.xlu1 %v580_v21  ;;  %v809_v23 = vsel %vm462_vm3, %v1323_v22, 0.0 }
 0x52e   : > { %701 = vrot.lane.b32.xlu0 %v1766_v35, %s1553_s6  ;;  %810 = vadd.xlane.f32.xlu1 %v809_v23 }
 0x5a1   : > { %v697_v25 = vpop.xlane.xlu0 %696 }
 0x5a5   : > { %v702_v29 = vpop.permute.xlu0 %701 }
 0x5a6   : > { %v707_v32 = vsel %vm481_vm4, %v702_v29, 0 }
 0x5b3   : > { %v582_v24 = vpop.xlane.xlu1 %581 }
 0x5b4   : > { %1324 = vrcp.f32 %v582_v24 }
 0x5b5   : > { %1326 = vrcp.f32 %v697_v25 }
 0x5b7   : > { %v811_v26 = vpop.xlane.xlu1 %810 }
 0x5b8   : > { %1328 = vrcp.f32 %v811_v26 }
 0x5c1   : > { %v1325_v27 = vpop.eup %1324 }
 0x5c2   : > { %v584_v28 = vmul.f32 %v1325_v27, %v1321_v20  ;;  %v1327_v31 = vpop.eup %1326 }
 0x5c3   : > { %v699_v33 = vmul.f32 %v1327_v31, %v1319_v14 }
 0x5c4   : > { %v585_v30 = vpack.c.bf16 %v584_v28, %v584_v28 }
 0x5c5   : > { %v700_v34 = vpack.c.bf16 %v699_v33, %v699_v33  ;;  %v1329_v35 = vpop.eup %1328 }
 0x5c6   : > { %1158 = vmatmul.mubr.msk.bf16.vlgmr.msra.gmra.mxu1 %vm462_vm3, %v585_v30  ;;  %v813_v36 = vmul.f32 %v1329_v35, %v1323_v22 }
 0x5c7   : > { %1168 = vmatpush3.bf16.msra.mxu1 %v707_v32  ;;  %1169 = vmatprep.mubr.msk.bf16.mxu1 %vm1549_vm1, %v1548_v11 }
 0x5c8   : > { %1179 = vmatprep.subr.bf16.mxu1 %v1548_v11  ;;  %v814_v37 = vpack.c.bf16 %v813_v36, %v813_v36 }
 0x5ce   : > { %1170 = vmatmul.mubr.msk.bf16.vlgmr.msra.gmra.mxu1 %vm462_vm3, %v700_v34 }
 0x5cf   : > { %1180 = vmatpush3.bf16.msra.mxu1 %v707_v32  ;;  %1181 = vmatprep.mubr.msk.bf16.mxu1 %vm1549_vm1, %v1548_v11 }
 0x5d6   : > { %1182 = vmatmul.mubr.msk.bf16.vlgmr.msra.gmra.mxu1 %vm462_vm3, %v814_v37 }
 0x686   : > { %v623_v39 = vpop.f32.mrf.mxu1 }
 0x687   : > { %v1113_v41 = vpack.c.bf16 %v623_v39, %v623_v39 }
 0x688   : > { %v1159_v42 = vpop.f32.mrf.mxu1 }
 0x689   : > { %633 = vrot.lane.b32.xlu1 %v1113_v41, %s1554_s15 }
 0x68a   : > { %v626_v43 = vpop.f32.mrf.mxu1 }
 0x68c   : > { %v1160_v44 = vpop.f32.mrf.mxu1 }
 0x68e   : > { %v743_v46 = vpop.f32.mrf.mxu1 }
 0x68f   : > { %v1114_v48 = vpack.c.bf16 %v743_v46, %v743_v46 }
 0x690   : > { %v1171_v49 = vpop.f32.mrf.mxu1 }
 0x691   : > { %753 = vrot.lane.b32.xlu1 %v1114_v48, %s1546_s25  ;;  %s1466_s25 = sshll.u32 %s1555_s7, 4  ;;  %s1467_s25 = int_to_ptr.vmem [resolvable:$false] %s1466_s25 }
 0x692   : > { %v746_v50 = vpop.f32.mrf.mxu1  ;;  %s1468_s11 = scalar_lea.vmem %s1467_s25, 128  ;;  %p1469_p10 = scmp.lt.s32.totalorder %s1822_s12, %s1467_s25 }
 0x693   : > { %p1470_p12 = scmp.lt.s32.totalorder %s1468_s11, %s1462_s16 }
 0x694   : > { %v1172_v51 = vpop.f32.mrf.mxu1 }
 0x695   : > { %p1471_p7 = por %p1470_p12, %p1469_p10 }
 0x696   : > { %v852_v52 = vpop.f32.mrf.mxu1 }
 0x697   : > { %v1115_v53 = vpack.c.bf16 %v852_v52, %v852_v52  ;;  %p1472_p5 = pnand %p1471_p7, %p1465_p9 }
 0x698   : > { %v1183_v54 = vpop.f32.mrf.mxu1 }
 0x699   : > { %862 = vrot.lane.b32.xlu0 %v1115_v53, %s1553_s6 }
 0x69a   : > { %v855_v55 = vpop.f32.mrf.mxu1 }
 0x69c   : > { %v1184_v56 = vpop.f32.mrf.mxu1 }
 0x6fb   : > { %v634_v57 = vpop.permute.xlu1 %633 }
 0x6fc   : > { %637 = vst.msk [vmem:[#allocation2] sm:$0xf] %vm636_vm6, %v634_v57 }
 0x703   : > { %v754_v11 = vpop.permute.xlu1 %753 }
 0x704   : > { %757 = vst.msk [vmem:[#allocation2] sm:$0xf] %vm756_vm7, %v754_v11 }
 0x70b   : > { %v863_v58 = vpop.permute.xlu0 %862 }
 0x70c   : > { %866 = vst.msk [vmem:[#allocation2] sm:$0xf] %vm865_vm8, %v863_v58 }
 0x713   : > { %v867_v59 = vld [vmem:[#allocation2] sm:$0xf] }
 0x714   : > { %1194 = vmatmul.mubr.msk.bf16.vlgmr.msra.gmra.mxu0 %vm344_vm0, %v867_v59 }
 0x7d4   : > { %v937_v60 = vpop.f32.mrf.mxu0 }
 0x7d5   : > { %v943_v61 = vpack.c.bf16 %v937_v60, %v937_v60 }
 0x7d6   : > { %v1195_v62 = vpop.f32.mrf.mxu0 }
 0x7d7   : > { %945 = vst.msk [vmem:[%s293_s10] sm:$0xf] %vm944_vm9, %v943_v61 }
 0x7d8   : > { %v940_v63 = vpop.f32.mrf.mxu0 }
 0x7d9   : > { %1475 = shalt.err (!%p1472_p5)
}
 0x7da   : > { %s1476_s23 = scalar_lea.hbm %s1820_s8, 64  ;;  %s1480_s29 = scalar_lea.hbm %s1868_s5, 128 }
 0x7db   : > { %p1477_p8 = scmp.ne.s32.totalorder %s1820_s8, %s1476_s23  ;;  %p1481_p6 = scmp.lt.s32.totalorder %s1820_s8, %s1868_s5 }
 0x7dc   : > { %p1482_p13 = scmp.lt.s32.totalorder %s1480_s29, %s1476_s23 }
 0x7dd   : > { %p1478_p1 = pnand %p1477_p8, %p1886_p2 }
 0x7de   : > { %p1483_p0 = por %p1482_p13, %p1481_p6 }
 0x7df   : > { %p1479_p3 = pneg %p1478_p1 }
 0x7e1   : > { %p1484_p4 = pnand %p1483_p0, %p1479_p3 }
 0x7e3   : > { %1487 = shalt.err (!%p1484_p4)
}
 0x7e4   : > { %1215 = dma.vmem_to_hbm [thread:$0]  (%p1886_p2), %s1822_s12, 64, %s1820_s8, %s947_s24   ;;  %v1196_v0 = vpop.f32.mrf.mxu0 }
 0x7e5 PF: > { %s972_s17 = sand.u32 1, %s1522_s18   ;;  %p1887_p11 = scmp.ne.s32.totalorder %s1878_s14, 0 }
 0x7e6   : > { %p1888_p9 = scmp.ge.s32.totalorder %s1534_s21, 2  ;;  %s973_s10 = scalar_lea.sflag [#allocation5], %s972_s17 }
 0x7e8   : > { %p1235_p10 = pnand %p1888_p9, %p1887_p11 }
 0x7ea   : > { %p1236_p12 = pneg %p1235_p10 }
 0x7ec   : > { %1517 = dma.done.wait (%p1236_p12), %s973_s10, 64  }
 0x7ed   : > { %1519 = vsyncadd (%p1236_p12), %s973_s10, 4294967232  ;;  %p20_p7 = scmp.ge.s32.totalorder %s1668_s28, 4   ;;  %s1889_s18 = smov %s1526_s19 }
 0x7ee   : > { %s1890_s19 = smov %s1530_s20  ;;  %s1891_s20 = smov %s1679_s9 }
 0x7ef   : > { %s1892_s21 = smov %s1668_s28  ;;  %22 = sbr.rel (!%p20_p7) target bundleno = 7 (0x7), region = 101 }
 0x7f4   :  { %978 = vsyncpa [#allocation4], 1 }
 0x7f5   :  { %980 = vsyncpa [#allocation4 + $0x1], 1 }
 0x7f6   :  { %981 = vsyncpa [#allocation7], 1 }
 0x7f7   :  { %982 = vsyncpa [#allocation10], 1 }
 0x7f8   :  { %983 = vsyncpa [#allocation5], 1 }
 0x7f9   :  { %985 = vsyncpa [#allocation5 + $0x1], 1 }

</bundles_post_ra>
